<compile_context>
chip_gen: v6e
topology: v6e:2x2x1
jax: 0.10.0
libtpu: 0.0.40
codegen_flags: <defaults>
</compile_context>

<pallas_src>
import functools

import jax
import jax.numpy as jnp
from jax.experimental import pallas as pl
from jax.experimental.pallas import tpu as pltpu


def _round_up(x, m):
    return ((x + m - 1) // m) * m


def _vmem_cap_bytes():
    """Physical VMEM capacity (per TensorCore); conservative fallback."""
    try:
        return int(pltpu.get_tpu_info().vmem_capacity_bytes)
    except Exception:
        return 64 * 1024 * 1024  # v7x-class conservative default


def _pick_tb_units(units, max_units):
    """Largest divisor of `units` that is <= max_units; prefer a divisor that
    yields >= 2 grid tiles (v7x megacore) unless that shrinks the tile > 4x."""
    best, best_multi = 1, None
    for d in range(1, min(units, max_units) + 1):
        if units % d == 0:
            best = d
            if units // d >= 2:
                best_multi = d
    if best_multi is not None and best_multi * 4 >= best:
        best = best_multi
    return best


def _choose_batch_tiling(B, itemsize, max_tb):
    """Pad B only as much as needed and pick a batch tile TB that divides the
    padded B.  Avoids the old round_up(B, TB) ~2x blow-up."""
    sublane = 16 if itemsize == 2 else 8
    max_units = max(1, max_tb // sublane)
    cands = []
    for align in sorted({sublane, 2 * sublane, min(128, max_tb), min(256, max_tb)}):
        B_p = _round_up(B, align)
        TB = _pick_tb_units(B_p // sublane, max_units) * sublane
        cands.append((B_p, TB, B_p // TB))
    min_bp = min(c[0] for c in cands)
    # Never pay more than ~12.5% (or 2 sublanes) of extra padded rows.
    allowed = max(min_bp + 2 * sublane, int(min_bp * 1.125))
    viable = [c for c in cands if c[0] <= allowed]
    # Prefer >=2 tiles (megacore), then fewer grid steps, then least padding.
    return min(viable, key=lambda c: (c[2] == 1, c[2], c[0]))


def pef_kernel(x_ref, w1_ref, b1_ref, w2_ref, b2_ref, o_ref):
    # fc1: (TB, D_in_p) @ (D_in_p, H_p) on the MXU, f32 accumulation.
    h = jnp.dot(x_ref[...], w1_ref[...], preferred_element_type=jnp.float32)
    # bias add + ReLU in f32 on the VPU (v5e has no bf16 VPU path).
    h = jnp.maximum(h + b1_ref[...], 0.0)
    # fc2: cast activations back to the weight dtype for the MXU, accumulate f32.
    out = jnp.dot(h.astype(w2_ref.dtype), w2_ref[...],
                  preferred_element_type=jnp.float32)
    out = out + b2_ref[...]
    o_ref[...] = out.astype(o_ref.dtype)


def prepare_pef_params(w1, b1, w2, b2, compute_dtype=jnp.bfloat16):
    """One-time lane padding (to 128 multiples) + cast of the weights/biases.

    w1: (input_dim, hidden); b1: (hidden,) or (1, hidden);
    w2: (hidden, output_dim); b2: (output_dim,) or (1, output_dim).
    Weights are stored pre-transposed (in_features, out_features).
    Zero padding keeps the math exact: padded x cols hit zero w1 rows, padded
    hidden cols are relu(0 + 0) = 0 into zero w2 rows, padded output cols are
    sliced off by the wrapper.
    """
    d_in, hidden = w1.shape
    d_out = w2.shape[1]
    d_in_p = _round_up(d_in, 128)
    h_p = _round_up(hidden, 128)
    d_out_p = _round_up(d_out, 128)

    w1p = jnp.pad(w1, ((0, d_in_p - d_in), (0, h_p - hidden))).astype(compute_dtype)
    w2p = jnp.pad(w2, ((0, h_p - hidden), (0, d_out_p - d_out))).astype(compute_dtype)
    # Biases stay f32 so the bias/ReLU epilogue runs on the f32 VPU path.
    b1p = jnp.pad(b1.reshape(1, hidden), ((0, 0), (0, h_p - hidden))).astype(jnp.float32)
    b2p = jnp.pad(b2.reshape(1, d_out), ((0, 0), (0, d_out_p - d_out))).astype(jnp.float32)
    return (w1p, b1p, w2p, b2p), d_out


@functools.partial(jax.jit, static_argnames=("d_out",))
def _pef_forward(x, w1p, b1p, w2p, b2p, d_out):
    out_dtype = x.dtype
    B, d_in = x.shape
    d_in_p, h_p = w1p.shape
    d_out_p = w2p.shape[1]
    comp_dtype = w1p.dtype
    itemsize = jnp.dtype(comp_dtype).itemsize
    out_itemsize = jnp.dtype(out_dtype).itemsize

    cap = _vmem_cap_bytes()
    max_tb = 1024 if cap >= (100 << 20) else 512   # v5e/v6e vs v7x headroom
    B_p, TB, n_tiles = _choose_batch_tiling(B, itemsize, max_tb)

    # x: cast / pad only when it is not a no-op (avoids extra HBM passes).
    xp = x
    if xp.dtype != comp_dtype:
        xp = xp.astype(comp_dtype)
    if (B_p != B) or (d_in_p != d_in):
        xp = jnp.pad(xp, ((0, B_p - B), (0, d_in_p - d_in)))

    # Explicit scoped-VMEM budget from the actual tile sizes.
    vmem_needed = (
        2 * TB * d_in_p * itemsize                       # x tile (double-buffered)
        + 2 * TB * d_out_p * out_itemsize                # out tile (double-buffered)
        + (d_in_p * h_p + h_p * d_out_p) * itemsize      # resident weights (1 buffer)
        + (h_p + d_out_p) * 4                            # resident biases (f32)
        + TB * h_p * 4 + TB * d_out_p * 4                # f32 intermediates
    )
    vmem_limit = max(2 * vmem_needed + (1 << 20), 32 << 20)
    vmem_limit = int(min(vmem_limit, int(cap * 0.9)))

    cost = pl.CostEstimate(
        flops=2 * B_p * (d_in_p * h_p + h_p * d_out_p),
        transcendentals=0,
        bytes_accessed=(B_p * d_in_p * itemsize
                        + (d_in_p * h_p + h_p * d_out_p) * itemsize
                        + (h_p + d_out_p) * 4
                        + B_p * d_out_p * out_itemsize),
    )

    # Resident operands: constant index_map -> never re-DMA; single buffer.
    resident = functools.partial(pl.BlockSpec, pipeline_mode=pl.Buffered(1))

    out_padded = pl.pallas_call(
        pef_kernel,
        out_shape=jax.ShapeDtypeStruct((B_p, d_out_p), out_dtype),
        grid_spec=pltpu.PrefetchScalarGridSpec(
            num_scalar_prefetch=0,
            grid=(n_tiles,),
            in_specs=[
                pl.BlockSpec((TB, d_in_p), lambda i: (i, 0)),      # x tile
                resident((d_in_p, h_p), lambda i: (0, 0)),         # w1 (resident)
                resident((1, h_p), lambda i: (0, 0)),              # b1 (resident)
                resident((h_p, d_out_p), lambda i: (0, 0)),        # w2 (resident)
                resident((1, d_out_p), lambda i: (0, 0)),          # b2 (resident)
            ],
            out_specs=pl.BlockSpec((TB, d_out_p), lambda i: (i, 0)),
        ),
        compiler_params=pltpu.CompilerParams(
            dimension_semantics=("parallel",),
            vmem_limit_bytes=vmem_limit,
        ),
        cost_estimate=cost,
    )(xp, w1p, b1p, w2p, b2p)

    # Skip the extra output HBM pass when no padding was applied.
    if B_p == B and d_out_p == d_out:
        return out_padded
    return out_padded[:B, :d_out]


def pef_forward(x, prepared_params):
    """x: (B, input_dim); prepared_params from prepare_pef_params()."""
    (w1p, b1p, w2p, b2p), d_out = prepared_params
    return _pef_forward(x, w1p, b1p, w2p, b2p, d_out=d_out)


def init_pef_params(key, input_dim=3, hidden_dim=10, output_dim=2,
                    dtype=jnp.float32):
    """Mimics PyTorch nn.Linear default init U[-1/sqrt(fan_in), 1/sqrt(fan_in)].
       Weights stored pre-transposed: (in_features, out_features)."""
    k1, k2, k3, k4 = jax.random.split(key, 4)
    bound1 = 1.0 / jnp.sqrt(input_dim)
    bound2 = 1.0 / jnp.sqrt(hidden_dim)
    w1 = jax.random.uniform(k1, (input_dim, hidden_dim), dtype, -bound1, bound1)
    b1 = jax.random.uniform(k2, (1, hidden_dim), dtype, -bound1, bound1)
    w2 = jax.random.uniform(k3, (hidden_dim, output_dim), dtype, -bound2, bound2)
    b2 = jax.random.uniform(k4, (1, output_dim), dtype, -bound2, bound2)
    return w1, b1, w2, b2


if __name__ == "__main__":
    key = jax.random.PRNGKey(0)
    k_x, k_p = jax.random.split(key)

    batch, input_dim, hidden_dim, output_dim = 8, 3, 10, 2
    x = jax.random.normal(k_x, (batch, input_dim), jnp.float32)
    w1, b1, w2, b2 = init_pef_params(k_p, input_dim, hidden_dim, output_dim)

    # Pure-JAX reference of the PyTorch forward semantics.
    ref = jnp.maximum(x @ w1 + b1, 0.0) @ w2 + b2

    # Default fast path: bf16 MXU matmuls, f32 accumulation / f32 epilogue.
    # (Documented: does not bit-match the f32 reference -> loose tolerance.)
    params_bf16 = prepare_pef_params(w1, b1, w2, b2, compute_dtype=jnp.bfloat16)
    out_bf16 = jax.block_until_ready(pef_forward(x, params_bf16))
    assert out_bf16.shape == (batch, output_dim)
    assert out_bf16.dtype == x.dtype
    assert jnp.allclose(out_bf16, ref, atol=5e-2, rtol=5e-2)

    # Exact f32 path (matches PyTorch f32 module numerics).
    params_f32 = prepare_pef_params(w1, b1, w2, b2, compute_dtype=jnp.float32)
    out_f32 = jax.block_until_ready(pef_forward(x, params_f32))
    assert out_f32.shape == (batch, output_dim)
    assert jnp.allclose(out_f32, ref, atol=1e-5, rtol=1e-5)

    print("KERNEL_OK")
</pallas_src>

<mosaic_0001>
module attributes {stable_mosaic.version = 11 : i64} {
  func.func @pef_kernel(%arg0: i32, %arg1: memref<16x128xbf16, #tpu.memory_space<vmem>>, %arg2: memref<128x128xbf16, #tpu.memory_space<vmem>>, %arg3: memref<1x128xf32, #tpu.memory_space<vmem>>, %arg4: memref<128x128xbf16, #tpu.memory_space<vmem>>, %arg5: memref<1x128xf32, #tpu.memory_space<vmem>>, %arg6: memref<16x128xf32, #tpu.memory_space<vmem>>) attributes {dimension_semantics = [#tpu.dimension_semantics<parallel>], iteration_bounds = array<i64: 2>, scalar_prefetch = 0 : i64, scratch_operands = 0 : i64, tpu.core_type = #tpu.core_type<tc>, window_params = [{transform_indices = @transform_0, window_bounds = array<i64: 16, 128>}, {pipeline_mode = #tpu.pipeline_mode<synchronous>, transform_indices = @transform_1, window_bounds = array<i64: 128, 128>}, {pipeline_mode = #tpu.pipeline_mode<synchronous>, transform_indices = @transform_2, window_bounds = array<i64: 1, 128>}, {pipeline_mode = #tpu.pipeline_mode<synchronous>, transform_indices = @transform_3, window_bounds = array<i64: 128, 128>}, {pipeline_mode = #tpu.pipeline_mode<synchronous>, transform_indices = @transform_4, window_bounds = array<i64: 1, 128>}, {transform_indices = @transform_5, window_bounds = array<i64: 16, 128>}]} {
    %c0 = arith.constant 0 : index
    %c0_0 = arith.constant 0 : index
    %0 = vector.load %arg1[%c0, %c0_0] : memref<16x128xbf16, #tpu.memory_space<vmem>>, vector<16x128xbf16>
    %c0_1 = arith.constant 0 : index
    %c0_2 = arith.constant 0 : index
    %1 = vector.load %arg2[%c0_1, %c0_2] : memref<128x128xbf16, #tpu.memory_space<vmem>>, vector<128x128xbf16>
    %cst = arith.constant dense<0.000000e+00> : vector<16x128xf32>
    %2 = tpu.matmul %0, %1, %cst {dimension_numbers = #tpu.dot_dimension_numbers<[1], [0], [0], [1], [0, 0, 1, 1], [], []>} : vector<16x128xbf16>, vector<128x128xbf16>, vector<16x128xf32> -> vector<16x128xf32>
    %c0_3 = arith.constant 0 : index
    %c0_4 = arith.constant 0 : index
    %3 = vector.load %arg3[%c0_3, %c0_4] : memref<1x128xf32, #tpu.memory_space<vmem>>, vector<1x128xf32>
    %4 = vector.broadcast %3 : vector<1x128xf32> to vector<16x128xf32>
    %5 = arith.addf %2, %4 : vector<16x128xf32>
    %cst_5 = arith.constant 0.000000e+00 : f32
    %6 = vector.broadcast %cst_5 : f32 to vector<16x128xf32>
    %7 = arith.maximumf %5, %6 : vector<16x128xf32>
    %8 = arith.truncf %7 : vector<16x128xf32> to vector<16x128xbf16>
    %c0_6 = arith.constant 0 : index
    %c0_7 = arith.constant 0 : index
    %9 = vector.load %arg4[%c0_6, %c0_7] : memref<128x128xbf16, #tpu.memory_space<vmem>>, vector<128x128xbf16>
    %cst_8 = arith.constant dense<0.000000e+00> : vector<16x128xf32>
    %10 = tpu.matmul %8, %9, %cst_8 {dimension_numbers = #tpu.dot_dimension_numbers<[1], [0], [0], [1], [0, 0, 1, 1], [], []>} : vector<16x128xbf16>, vector<128x128xbf16>, vector<16x128xf32> -> vector<16x128xf32>
    %c0_9 = arith.constant 0 : index
    %c0_10 = arith.constant 0 : index
    %11 = vector.load %arg5[%c0_9, %c0_10] : memref<1x128xf32, #tpu.memory_space<vmem>>, vector<1x128xf32>
    %12 = vector.broadcast %11 : vector<1x128xf32> to vector<16x128xf32>
    %13 = arith.addf %10, %12 : vector<16x128xf32>
    %c0_11 = arith.constant 0 : index
    %c0_12 = arith.constant 0 : index
    %14 = vector.load %arg6[%c0_11, %c0_12] : memref<16x128xf32, #tpu.memory_space<vmem>>, vector<16x128xf32>
    tpu.vector_store %arg6[%c0_11, %c0_12], %13 {strides = array<i32>} : memref<16x128xf32, #tpu.memory_space<vmem>>, vector<16x128xf32>,
    return
  }
  func.func @transform_0(%arg0: i32) -> (i32, i32) {
    %c0_i32 = arith.constant 0 : i32
    %c0_i32_0 = arith.constant 0 : i32
    return %arg0, %c0_i32 : i32, i32
  }
  func.func @transform_1(%arg0: i32) -> (i32, i32) {
    %c0_i32 = arith.constant 0 : i32
    %c0_i32_0 = arith.constant 0 : i32
    %c0_i32_1 = arith.constant 0 : i32
    return %c0_i32, %c0_i32_0 : i32, i32
  }
  func.func @transform_2(%arg0: i32) -> (i32, i32) {
    %c0_i32 = arith.constant 0 : i32
    %c0_i32_0 = arith.constant 0 : i32
    %c0_i32_1 = arith.constant 0 : i32
    return %c0_i32, %c0_i32_0 : i32, i32
  }
  func.func @transform_3(%arg0: i32) -> (i32, i32) {
    %c0_i32 = arith.constant 0 : i32
    %c0_i32_0 = arith.constant 0 : i32
    %c0_i32_1 = arith.constant 0 : i32
    return %c0_i32, %c0_i32_0 : i32, i32
  }
  func.func @transform_4(%arg0: i32) -> (i32, i32) {
    %c0_i32 = arith.constant 0 : i32
    %c0_i32_0 = arith.constant 0 : i32
    %c0_i32_1 = arith.constant 0 : i32
    return %c0_i32, %c0_i32_0 : i32, i32
  }
  func.func @transform_5(%arg0: i32) -> (i32, i32) {
    %c0_i32 = arith.constant 0 : i32
    %c0_i32_0 = arith.constant 0 : i32
    return %arg0, %c0_i32 : i32, i32
  }
}

</mosaic_0001>

<bundles_post_ra>
// kernel: _pef_forward.1
= control target key start
LH: loop header
LB: loop body
LE: loop exit
PB: predicated region body
PF: predicated region fallthrough
CT: control target
= control target key end

     0   :  { %10 = vsyncpa [#allocation3], 0  ;;  %s898_s0 = inlined_call_operand.vmem [shape: bf16[32,128], index: 0, kind: input, shape index: {}]   ;;  %s899_s1 = inlined_call_operand.hbm [shape: bf16[128,128], index: 1, kind: input, shape index: {}]   ;;  %s900_s2 = inlined_call_operand.vmem [shape: f32[1,128], index: 2, kind: input, shape index: {}]   ;;  %s901_s3 = inlined_call_operand.hbm [shape: bf16[128,128], index: 3, kind: input, shape index: {}]   ;;  %s902_s4 = inlined_call_operand.vmem [shape: f32[1,128], index: 4, kind: input, shape index: {}]   ;;  %s903_s5 = inlined_call_operand.vmem [shape: f32[32,128], index: 5, kind: output, shape index: {}]  }
   0x1   :  { %11 = vsyncpa [#allocation5], 0  ;;  %s820_s18 = smov 0  }
   0x2 LB: > { %s574_s19 = sadd.s32 4294967295, %s782_s18   ;;  %p576_p0 = scmp.ge.s32.totalorder %s782_s18, 1  ;;  %s782_s18 = sphi %s820_s18, %s17_s18  }
   0x3   : > { %p158_p1 = scmp.lt.s32.totalorder %s782_s18, 3  ;;  %s784_s20 = smov [#allocation2]  }
   0x4   : > { %s170_s21 = sshll.u32 %s784_s20, 4  ;;  %p834_p3 = scmp.eq.s32.totalorder %s574_s19, 0  ;;  %s171_s21 = int_to_ptr.vmem [resolvable:$true] %s170_s21 }
   0x5   : > { %p828_p2 = pnand %p576_p0, %p158_p1  ;;  %s785_s24 = smov [#allocation4]  }
   0x6   : > { %s186_s25 = sshll.u32 %s785_s24, 4  ;;  %s727_s27 = scalar_lea.vmem %s171_s21, 1024  ;;  %s187_s25 = int_to_ptr.vmem [resolvable:$true] %s186_s25 }
   0x7   : > { %p674_p4 = pneg %p828_p2  ;;  %p728_p7 = scmp.ne.s32.totalorder %s171_s21, %s727_s27 }
   0x8   : > { %p735_p10 = scmp.lt.s32.totalorder %s171_s21, %s171_s21  ;;  %p736_p11 = scmp.lt.s32.totalorder %s727_s27, %s727_s27 }
   0x9   : > { %p842_p5 = pnand %p834_p3, %p674_p4 }
   0xa   : > { %p737_p12 = por %p736_p11, %p735_p10 }
   0xb   : > { %p718_p6 = pneg %p842_p5 }
   0xd   : > { %p730_p8 = pnand %p728_p7, %p718_p6 }
   0xf   : > { %p731_p9 = pneg %p730_p8 }
  0x11   : > { %p738_p13 = pnand %p737_p12, %p731_p9 }
  0x13   : > { %741 = shalt.err (!%p738_p13)
}
  0x14   : > { %s786_s28 = smov 64   ;;  %s787_s29 = smov 4  }
  0x15   : > { %677 = dma.hbm_to_vmem [thread:$0]  (!%p842_p5), %s899_s1, 1024, %s171_s21, [#allocation3], %s786_s28, %s786_s28, %s787_s29  }
  0x16   : > { %s753_s7 = scalar_lea.vmem %s187_s25, 1024  ;;  %p761_p7 = scmp.lt.s32.totalorder %s187_s25, %s187_s25 }
  0x17   : > { %p754_p0 = scmp.ne.s32.totalorder %s187_s25, %s753_s7  ;;  %p762_p8 = scmp.lt.s32.totalorder %s753_s7, %s753_s7 }
  0x19   : > { %p756_p1 = pnand %p754_p0, %p718_p6  ;;  %p763_p10 = por %p762_p8, %p761_p7 }
  0x1b   : > { %p757_p4 = pneg %p756_p1 }
  0x1d   : > { %p764_p9 = pnand %p763_p10, %p757_p4 }
  0x1f   : > { %767 = shalt.err (!%p764_p9)
}
  0x20   : > { %680 = dma.hbm_to_vmem [thread:$0]  (!%p842_p5), %s901_s3, 1024, %s187_s25, [#allocation5], %s786_s28, %s786_s28, %s787_s29  }
  0x21   : > { %214 = sbr.rel (%p828_p2) target bundleno = 478 (0x1de), region = 40 }
  0x26   : > { %773 = dma.done.wait (%p834_p3), [#allocation3], 1024  }
  0x27   : > { %775 = vsyncadd (%p834_p3), [#allocation3], 4294966272 }
  0x28   : > { %777 = dma.done.wait (%p834_p3), [#allocation5], 1024  }
  0x29   : > { %779 = vsyncadd (%p834_p3), [#allocation5], 4294966272  ;;  %s583_s10 = sshll.u32 %s574_s19, 1  ;;  %v788_v0 = vmov 0.0   ;;  %vm789_vm0 = vmmov 0   ;;  %v699_v1 = vld [vmem:[#allocation2 + $0x38] sm:$0xff]  }
  0x2a   : > { %626 = vmatprep.subr.bf16.mxu0 %v788_v0  ;;  %642 = vmatprep.mubr.msk.bf16.mxu0 %vm789_vm0, %v788_v0  ;;  %p247_p2 = scmp.lt.s32.totalorder %s583_s10, 3  ;;  %v700_v2 = vld [vmem:[#allocation2 + $0x30] sm:$0xff]   ;;  %v701_v3 = vld [vmem:[#allocation2 + $0x28] sm:$0xff]   ;;  %v708_v4 = vld [vmem:[#allocation4 + $0x38] sm:$0xff]  }
  0x2b   : > { %646 = vmatprep.subr.bf16.mxu1 %v788_v0  ;;  %662 = vmatprep.mubr.msk.bf16.mxu1 %vm789_vm0, %v788_v0  ;;  %v702_v5 = vld [vmem:[#allocation2 + $0x20] sm:$0xff]   ;;  %v709_v6 = vld [vmem:[#allocation4 + $0x30] sm:$0xff]   ;;  %v703_v7 = vld [vmem:[#allocation2 + $0x18] sm:$0xff]  }
  0x2c   : > { %s908_s10 = smov (!%p247_p2, %s583_s10), 3  ;;  %627 = vmatpush3.bf16.msra.mxu0 %v699_v1  ;;  %647 = vmatpush3.bf16.msra.mxu1 %v708_v4  ;;  %v710_v8 = vld [vmem:[#allocation4 + $0x28] sm:$0xff]   ;;  %v704_v9 = vld [vmem:[#allocation2 + $0x10] sm:$0xff]   ;;  %v711_v10 = vld [vmem:[#allocation4 + $0x20] sm:$0xff]  }
  0x2d   : > { %628 = vmatprep.subr.bf16.mxu0 %v788_v0  ;;  %s584_s11 = sshll.u32 %s908_s10, 2  ;;  %648 = vmatprep.subr.bf16.mxu1 %v788_v0  ;;  %v705_v11 = vld [vmem:[#allocation2 + $0x8] sm:$0xff]   ;;  %v712_v12 = vld [vmem:[#allocation4 + $0x18] sm:$0xff]   ;;  %v706_v13 = vld [vmem:[#allocation2] sm:$0xff]   ;;  %s586_s17 = sshll.u32 %s908_s10, 3 }
  0x2e   : > { %s882_s14 = scalar_lea.vmem %s898_s0, %s584_s11  ;;  %v713_v15 = vld [vmem:[#allocation4 + $0x10] sm:$0xff]   ;;  %v714_v16 = vld [vmem:[#allocation4 + $0x8] sm:$0xff]   ;;  %v715_v17 = vld [vmem:[#allocation4] sm:$0xff]   ;;  %s256_s23 = scalar_lea.vmem %s903_s5, %s586_s17 }
  0x2f   : > { %v707_v14 = vld [vmem:[%s882_s14] sm:$0xff]  }
  0x30   : > { %629 = vmatpush3.bf16.msra.mxu0 %v700_v2  ;;  %649 = vmatpush3.bf16.msra.mxu1 %v709_v6  ;;  %v587_v18 = vld [vmem:[%s900_s2] ss:$0 sm:$0xff] }
  0x31   : > { %630 = vmatprep.subr.bf16.mxu0 %v788_v0  ;;  %650 = vmatprep.subr.bf16.mxu1 %v788_v0  ;;  %v597_v28 = vld [vmem:[%s902_s4] ss:$0 sm:$0xff] }
  0x34   : > { %631 = vmatpush3.bf16.msra.mxu0 %v701_v3  ;;  %651 = vmatpush3.bf16.msra.mxu1 %v710_v8 }
  0x35   : > { %632 = vmatprep.subr.bf16.mxu0 %v788_v0  ;;  %652 = vmatprep.subr.bf16.mxu1 %v788_v0 }
  0x38   : > { %633 = vmatpush3.bf16.msra.mxu0 %v702_v5  ;;  %653 = vmatpush3.bf16.msra.mxu1 %v711_v10 }
  0x39   : > { %634 = vmatprep.subr.bf16.mxu0 %v788_v0  ;;  %654 = vmatprep.subr.bf16.mxu1 %v788_v0 }
  0x3c   : > { %635 = vmatpush3.bf16.msra.mxu0 %v703_v7  ;;  %655 = vmatpush3.bf16.msra.mxu1 %v712_v12 }
  0x3d   : > { %636 = vmatprep.subr.bf16.mxu0 %v788_v0  ;;  %656 = vmatprep.subr.bf16.mxu1 %v788_v0 }
  0x40   : > { %637 = vmatpush3.bf16.msra.mxu0 %v704_v9  ;;  %657 = vmatpush3.bf16.msra.mxu1 %v713_v15 }
  0x41   : > { %638 = vmatprep.subr.bf16.mxu0 %v788_v0  ;;  %658 = vmatprep.subr.bf16.mxu1 %v788_v0 }
  0x44   : > { %639 = vmatpush3.bf16.msra.mxu0 %v705_v11  ;;  %659 = vmatpush3.bf16.msra.mxu1 %v714_v16 }
  0x45   : > { %640 = vmatprep.subr.bf16.mxu0 %v788_v0  ;;  %660 = vmatprep.subr.bf16.mxu1 %v788_v0 }
  0x48   : > { %641 = vmatpush3.bf16.msra.mxu0 %v706_v13  ;;  %661 = vmatpush3.bf16.msra.mxu1 %v715_v17 }
  0x4b   : > { %643 = vmatmul.mubr.bf16.vlgmr.msra.gmra.mxu0 %v707_v14 }
 0x10b   : > { %v372_v19 = vpop.f32.mrf.mxu0 }
 0x10c   : > { %v373_v21 = vadd.f32 %v587_v18, %v372_v19 }
 0x10d   : > { %v644_v20 = vpop.f32.mrf.mxu0 }
 0x10e   : > { %v379_v25 = vmax.f32 %v373_v21, 0.0 }
 0x10f   : > { %v375_v22 = vpop.f32.mrf.mxu0 }
 0x110   : > { %v376_v23 = vadd.f32 %v587_v18, %v375_v22 }
 0x111   : > { %v645_v24 = vpop.f32.mrf.mxu0 }
 0x112   : > { %v380_v26 = vmax.f32 %v376_v23, 0.0 }
 0x114   : > { %v381_v27 = vpack.c.bf16 %v380_v26, %v379_v25 }
 0x116   : > { %663 = vmatmul.mubr.bf16.vlgmr.msra.gmra.mxu1 %v381_v27 }
 0x1d6   : > { %v487_v29 = vpop.f32.mrf.mxu1 }
 0x1d7   : > { %v488_v30 = vadd.f32 %v597_v28, %v487_v29 }
 0x1d8   : > { %v664_v31 = vpop.f32.mrf.mxu1 }
 0x1d9   : > { %494 = vst [vmem:[%s256_s23] sm:$0xff] %v488_v30 }
 0x1da   : > { %v490_v32 = vpop.f32.mrf.mxu1 }
 0x1db   : > { %v491_v33 = vadd.f32 %v597_v28, %v490_v32 }
 0x1dc   : > { %v665_v34 = vpop.f32.mrf.mxu1 }
 0x1dd   : > { %495 = vst [vmem:[%s256_s23 + $0x8] sm:$0xff] %v491_v33 }
 0x1de PF: > { %s17_s18 = sadd.s32 1, %s782_s18  }
 0x1df   : > { %p14_p3 = scmp.ge.s32.totalorder %s17_s18, 4  }
 0x1e1   :  { %16 = sbr.rel (!%p14_p3) target bundleno = 2 (0x2), region = 79 }
 0x1e6   :  { %518 = vsyncpa [#allocation3], 1 }
 0x1e7   :  { %520 = vsyncpa [#allocation3 + $0x1], 1 }
 0x1e8   :  { %521 = vsyncpa [#allocation5], 1 }

</bundles_post_ra>
